<compile_context>
chip_gen: v7x
topology: tpu7x:2x2x1
jax: 0.10.0
libtpu: 0.0.40
codegen_flags: <defaults>
</compile_context>

<pallas_src>
import jax
import jax.numpy as jnp
from jax import lax
from jax.experimental import pallas as pl
from jax.experimental.pallas import tpu as pltpu


def _head_kernel(x_ref, w_ref, o_ref):
    # x_ref: (1, T, C)   f32   -- one batch element per grid step
    # w_ref: (C, 3*Hp)   bf16  -- fused, lane-padded [W_k | W_q | W_v]
    # o_ref: (1, T, H)   f32   -- per-batch output block, written directly
    T = x_ref.shape[1]
    Hp = w_ref.shape[1] // 3          # padded head width (multiple of 128)
    H = o_ref.shape[2]                # true head size (module head_size)

    # In-kernel bf16 cast of the activations (review item #1).
    x = x_ref[0].astype(jnp.bfloat16)            # (T, C)
    w = w_ref[...]                                # (C, 3*Hp) bf16

    # Fused QKV projection: one MXU matmul, f32 accumulation.
    qkv = jnp.dot(x, w, preferred_element_type=jnp.float32)     # (T, 3*Hp)

    # Scale uses the TRUE head size (padding columns are zero, so scores match).
    scale = jnp.float32(H) ** -0.5

    # Lane-tile aligned slices (Hp is a multiple of 128): no masked selects.
    k = qkv[:, 0:Hp].astype(jnp.bfloat16)                        # (T, Hp)
    q = (qkv[:, Hp:2 * Hp] * scale).astype(jnp.bfloat16)         # scale q, not (T,T)
    v = qkv[:, 2 * Hp:3 * Hp].astype(jnp.bfloat16)               # (T, Hp)

    # Attention scores: contract the head axes directly (no k transpose).
    s = lax.dot_general(q, k, dimension_numbers=(((1,), (1,)), ((), ())),
                        preferred_element_type=jnp.float32)      # (T, T)

    # Causal mask (lower-triangular). Every row has >=1 unmasked entry.
    row = lax.broadcasted_iota(jnp.int32, (T, T), 0)
    col = lax.broadcasted_iota(jnp.int32, (T, T), 1)
    s = jnp.where(col <= row, s, -jnp.inf)

    # Softmax along the last axis, all in f32.
    m = jnp.max(s, axis=-1, keepdims=True)
    e = jnp.exp(s - m)
    d = jnp.sum(e, axis=-1, keepdims=True)
    p = e * pl.reciprocal(d, approx=True)

    # dropout: identity in eval mode.

    o = jnp.dot(p.astype(jnp.bfloat16), v,
                preferred_element_type=jnp.float32)              # (T, Hp)
    # Padded v columns are zero, so o[:, H:] == 0; store the real H columns.
    o_ref[0] = o[:, :H].astype(o_ref.dtype)


def fuse_head_weights(w_key, w_query, w_value, lane=128):
    """One-time parameter prep: fuse + zero-pad each head segment to a full
    128-lane tile and cast to bf16. Call this ONCE at init, not per forward."""
    C, H = w_key.shape
    Hp = ((H + lane - 1) // lane) * lane

    def pad(w):
        return jnp.pad(w, ((0, 0), (0, Hp - H)))

    w_qkv = jnp.concatenate([pad(w_key), pad(w_query), pad(w_value)],
                            axis=1).astype(jnp.bfloat16)          # (C, 3*Hp)
    return w_qkv, H


def head_forward(x, w_qkv, head_size):
    """x: (N, T, C) float32; w_qkv: (C, 3*Hp) bf16 from fuse_head_weights."""
    N, T, C = x.shape
    Hp = w_qkv.shape[1] // 3
    H = head_size

    return pl.pallas_call(
        _head_kernel,
        out_shape=jax.ShapeDtypeStruct((N, T, H), jnp.float32),
        grid_spec=pltpu.PrefetchScalarGridSpec(
            num_scalar_prefetch=0,
            grid=(N,),                                  # one batch element / step
            in_specs=[
                pl.BlockSpec((1, T, C), lambda n: (n, 0, 0)),     # x (f32)
                pl.BlockSpec((C, 3 * Hp), lambda n: (0, 0)),      # fused weights
            ],
            out_specs=pl.BlockSpec((1, T, H), lambda n: (n, 0, 0)),
        ),
        compiler_params=pltpu.CompilerParams(
            dimension_semantics=("parallel",)),          # 2 TCs on v7x
    )(x, w_qkv)


def head_reference(x, w_key, w_query, w_value):
    """Pure-JAX reference matching the PyTorch forward (eval mode), f32."""
    k = x @ w_key
    q = x @ w_query
    v = x @ w_value
    H = k.shape[-1]
    wei = (q @ jnp.swapaxes(k, -2, -1)) * (H ** -0.5)
    T = x.shape[1]
    tril = jnp.tril(jnp.ones((T, T), dtype=bool))
    wei = jnp.where(tril[None, :, :], wei, -jnp.inf)
    wei = jax.nn.softmax(wei, axis=-1)
    return wei @ v


if __name__ == "__main__":
    # Small shapes consistent with the module: C = n_embd = 384, T <= block_size.
    N, T, C, H = 2, 128, 384, 64   # batch, seq, n_embd, head_size

    key = jax.random.PRNGKey(0)
    kx, kk, kq, kv = jax.random.split(key, 4)

    x = jax.random.normal(kx, (N, T, C), dtype=jnp.float32)
    # Deterministic init mimicking nn.Linear's uniform(-1/sqrt(C), 1/sqrt(C));
    # stored pre-transposed as (C, H).
    bound = 1.0 / jnp.sqrt(jnp.float32(C))
    w_key = jax.random.uniform(kk, (C, H), jnp.float32, -bound, bound)
    w_query = jax.random.uniform(kq, (C, H), jnp.float32, -bound, bound)
    w_value = jax.random.uniform(kv, (C, H), jnp.float32, -bound, bound)

    # One-time parameter prep (hoisted out of the per-call path).
    w_qkv, head_size = fuse_head_weights(w_key, w_query, w_value)
    w_qkv = jax.block_until_ready(w_qkv)

    out = head_forward(x, w_qkv, head_size)
    out = jax.block_until_ready(out)

    ref = head_reference(x, w_key, w_query, w_value)
    assert out.shape == (N, T, H)
    # bf16 MXU operands (f32 accumulation) -> loosened tolerance vs f32 reference.
    assert jnp.allclose(out, ref, atol=3e-2, rtol=3e-2), "mismatch vs reference"

    print("KERNEL_OK")
</pallas_src>

<mosaic_0001>
module attributes {stable_mosaic.version = 11 : i64} {
  func.func @_head_kernel(%arg0: i32, %arg1: memref<1x128x384xf32, #tpu.memory_space<vmem>>, %arg2: memref<384x384xbf16, #tpu.memory_space<vmem>>, %arg3: memref<1x128x64xf32, #tpu.memory_space<vmem>>) attributes {dimension_semantics = [#tpu.dimension_semantics<parallel>], iteration_bounds = array<i64: 2>, scalar_prefetch = 0 : i64, scratch_operands = 0 : i64, tpu.core_type = #tpu.core_type<tc>, window_params = [{transform_indices = @transform_0, window_bounds = array<i64: 1, 128, 384>}, {pipeline_mode = #tpu.pipeline_mode<synchronous>, transform_indices = @transform_1, window_bounds = array<i64: 384, 384>}, {transform_indices = @transform_2, window_bounds = array<i64: 1, 128, 64>}]} {
    %c0 = arith.constant 0 : index
    %c0_0 = arith.constant 0 : index
    %c0_1 = arith.constant 0 : index
    %0 = vector.load %arg1[%c0, %c0_0, %c0_1] : memref<1x128x384xf32, #tpu.memory_space<vmem>>, vector<1x128x384xf32>
    %1 = vector.shape_cast %0 : vector<1x128x384xf32> to vector<128x384xf32>
    %2 = arith.truncf %1 : vector<128x384xf32> to vector<128x384xbf16>
    %c0_2 = arith.constant 0 : index
    %c0_3 = arith.constant 0 : index
    %3 = vector.load %arg2[%c0_2, %c0_3] : memref<384x384xbf16, #tpu.memory_space<vmem>>, vector<384x384xbf16>
    %cst = arith.constant dense<0.000000e+00> : vector<128x384xf32>
    %4 = tpu.matmul %2, %3, %cst {dimension_numbers = #tpu.dot_dimension_numbers<[1], [0], [0], [1], [0, 0, 1, 1], [], []>} : vector<128x384xbf16>, vector<384x384xbf16>, vector<128x384xf32> -> vector<128x384xf32>
    %cst_4 = arith.constant 6.400000e+01 : f32
    %cst_5 = arith.constant -5.000000e-01 : f32
    %5 = math.powf %cst_4, %cst_5 : f32
    %6 = vector.extract_strided_slice %4 {offsets = [0, 0], sizes = [128, 128], strides = [1, 1]} : vector<128x384xf32> to vector<128x128xf32>
    %7 = arith.truncf %6 : vector<128x128xf32> to vector<128x128xbf16>
    %8 = vector.extract_strided_slice %4 {offsets = [0, 128], sizes = [128, 128], strides = [1, 1]} : vector<128x384xf32> to vector<128x128xf32>
    %9 = vector.broadcast %5 : f32 to vector<128x128xf32>
    %10 = arith.mulf %8, %9 : vector<128x128xf32>
    %11 = arith.truncf %10 : vector<128x128xf32> to vector<128x128xbf16>
    %12 = vector.extract_strided_slice %4 {offsets = [0, 256], sizes = [128, 128], strides = [1, 1]} : vector<128x384xf32> to vector<128x128xf32>
    %13 = arith.truncf %12 : vector<128x128xf32> to vector<128x128xbf16>
    %cst_6 = arith.constant dense<0.000000e+00> : vector<128x128xf32>
    %14 = tpu.matmul %11, %7, %cst_6 {dimension_numbers = #tpu.dot_dimension_numbers<[1], [1], [0], [0], [0, 0, 1, 0], [], []>} : vector<128x128xbf16>, vector<128x128xbf16>, vector<128x128xf32> -> vector<128x128xf32>
    %15 = tpu.iota {dimensions = array<i32: 0>} : vector<128x128xi32>
    %16 = tpu.iota {dimensions = array<i32: 1>} : vector<128x128xi32>
    %17 = arith.cmpi sle, %16, %15 : vector<128x128xi32>
    %cst_7 = arith.constant 0xFF800000 : f32
    %18 = vector.broadcast %cst_7 : f32 to vector<128x128xf32>
    %19 = arith.select %17, %14, %18 : vector<128x128xi1>, vector<128x128xf32>
    %cst_8 = arith.constant dense<0xFF800000> : vector<128xf32>
    %20 = vector.multi_reduction <maximumf>, %19, %cst_8 [1] : vector<128x128xf32> to vector<128xf32>
    %21 = vector.shape_cast %20 : vector<128xf32> to vector<128x1xf32>
    %22 = vector.broadcast %21 : vector<128x1xf32> to vector<128x128xf32>
    %23 = arith.subf %19, %22 : vector<128x128xf32>
    %24 = math.exp %23 : vector<128x128xf32>
    %cst_9 = arith.constant dense<0.000000e+00> : vector<128xf32>
    %25 = vector.multi_reduction <add>, %24, %cst_9 [1] : vector<128x128xf32> to vector<128xf32>
    %26 = vector.shape_cast %25 : vector<128xf32> to vector<128x1xf32>
    %27 = tpu.reciprocal %26 {approx = true} : vector<128x1xf32> -> vector<128x1xf32>
    %28 = vector.broadcast %27 : vector<128x1xf32> to vector<128x128xf32>
    %29 = arith.mulf %24, %28 : vector<128x128xf32>
    %30 = arith.truncf %29 : vector<128x128xf32> to vector<128x128xbf16>
    %cst_10 = arith.constant dense<0.000000e+00> : vector<128x128xf32>
    %31 = tpu.matmul %30, %13, %cst_10 {dimension_numbers = #tpu.dot_dimension_numbers<[1], [0], [0], [1], [0, 0, 1, 1], [], []>} : vector<128x128xbf16>, vector<128x128xbf16>, vector<128x128xf32> -> vector<128x128xf32>
    %32 = vector.extract_strided_slice %31 {offsets = [0, 0], sizes = [128, 64], strides = [1, 1]} : vector<128x128xf32> to vector<128x64xf32>
    %c0_11 = arith.constant 0 : index
    %c0_12 = arith.constant 0 : index
    %c0_13 = arith.constant 0 : index
    %33 = vector.load %arg3[%c0_11, %c0_12, %c0_13] : memref<1x128x64xf32, #tpu.memory_space<vmem>>, vector<1x128x64xf32>
    %34 = vector.shape_cast %33 : vector<1x128x64xf32> to vector<128x64xf32>
    %35 = vector.shape_cast %32 : vector<128x64xf32> to vector<1x128x64xf32>
    tpu.vector_store %arg3[%c0_11, %c0_12, %c0_13], %35 {strides = array<i32>} : memref<1x128x64xf32, #tpu.memory_space<vmem>>, vector<1x128x64xf32>,
    return
  }
  func.func @transform_0(%arg0: i32) -> (i32, i32, i32) {
    %c0_i32 = arith.constant 0 : i32
    %c0_i32_0 = arith.constant 0 : i32
    %c0_i32_1 = arith.constant 0 : i32
    return %arg0, %c0_i32, %c0_i32_0 : i32, i32, i32
  }
  func.func @transform_1(%arg0: i32) -> (i32, i32) {
    %c0_i32 = arith.constant 0 : i32
    %c0_i32_0 = arith.constant 0 : i32
    %c0_i32_1 = arith.constant 0 : i32
    return %c0_i32, %c0_i32_0 : i32, i32
  }
  func.func @transform_2(%arg0: i32) -> (i32, i32, i32) {
    %c0_i32 = arith.constant 0 : i32
    %c0_i32_0 = arith.constant 0 : i32
    %c0_i32_1 = arith.constant 0 : i32
    return %arg0, %c0_i32, %c0_i32_0 : i32, i32, i32
  }
}

</mosaic_0001>

<bundles_post_ra>
// kernel: tpu_custom_call.1
= control target key start
LH: loop header
LB: loop body
LE: loop exit
PB: predicated region body
PF: predicated region fallthrough
CT: control target
= control target key end

     0   :  { %7 = vsyncpa [#allocation3], 0  ;;  %s2883_s0 = inlined_call_operand.hbm [shape: f32[2,128,384], index: 0, kind: input, shape index: {}]   ;;  %s2884_s1 = inlined_call_operand.hbm [shape: bf16[384,384], index: 1, kind: input, shape index: {}]   ;;  %s2885_s2 = inlined_call_operand.vmem [shape: f32[2,128,64], index: 2, kind: output, shape index: {}]  }
   0x1   :  { %9 = vsyncpa [#allocation3 + $0x1], 0 }
   0x2   :  { %10 = vsyncpa [#allocation5], 0  ;;  %s2361_s9 = smov 0   ;;  %s2363_s10 = smov 0  }
   0x3   :  { %s2365_s11 = smov 0   ;;  %s2367_s12 = smov 0  }
   0x4 LB: > { %s2380_s13 = sadd.s32 4294967295, %s2337_s12   ;;  %p36_p0 = scmp.ne.s32.totalorder %s2329_s10, %s2325_s9  ;;  %s2337_s12 = sphi %s2367_s12, %s2900_s12   ;;  %s2333_s11 = sphi %s2365_s11, %s2899_s11   ;;  %s2329_s10 = sphi %s2363_s10, %s2898_s10   ;;  %s2325_s9 = sphi %s2361_s9, %s2897_s9  }
   0x5   : > { %p2886_p1 = scmp.eq.s32.totalorder %s2380_s13, 0  ;;  %p1684_p2 = scmp.ge.s32.totalorder %s2337_s12, 1 }
   0x6   : > { %p94_p3 = scmp.lt.s32.totalorder %s2337_s12, 3  ;;  %s2339_s16 = smov [#allocation4]  }
   0x7   : > { %p2388_p4 = por %p2886_p1, %p36_p0  ;;  %s106_s17 = sshll.u32 %s2339_s16, 4  ;;  %s107_s17 = int_to_ptr.vmem [resolvable:$true] %s106_s17 }
   0x8   : > { %p2392_p5 = pnand %p1684_p2, %p94_p3  ;;  %s2405_s19 = sadd.s32 1, %s2337_s12  }
   0x9   : > { %s2889_s14 = scalar_select %p2388_p4, 1, 0 }
   0xa   : > { %s2890_s15 = scalar_select %p2392_p5, 1, 0 }
   0xb   : > { %p2032_p6 = pneg %p2392_p5  ;;  %s23_s20 = sadd.s32 1, %s2333_s11 }
   0xc   : > { %s20_s21 = ssub.s32 %s2337_s12, %s2405_s19  ;;  %s2241_s24 = scalar_lea.hbm %s2884_s1, 9216 }
   0xd   : > { %p2400_p7 = pnand %p2032_p6, %p2886_p1  ;;  %p2242_p8 = scmp.ne.s32.totalorder %s2884_s1, %s2241_s24 }
   0xe   : > { %p2248_p12 = scmp.lt.u32.totalorder %s2241_s24, %s2884_s1 }
   0xf   : > { %p2243_p9 = pneg %p2400_p7 }
  0x11   : > { %p2244_p10 = pnand %p2243_p9, %p2242_p8 }
  0x13   : > { %p2245_p11 = pneg %p2244_p10 }
  0x15   : > { %p2250_p13 = pnand %p2248_p12, %p2245_p11 }
  0x17   : > { %2253 = shalt.err (!%p2250_p13)
}
  0x18   : > { %s2254_s29 = scalar_lea.vmem %s107_s17, 9216  ;;  %p2262_p6 = scmp.lt.s32.totalorder %s107_s17, %s107_s17 }
  0x19   : > { %p2255_p0 = scmp.ne.s32.totalorder %s107_s17, %s2254_s29  ;;  %p2263_p1 = scmp.lt.s32.totalorder %s2254_s29, %s2254_s29 }
  0x1b   : > { %p2257_p2 = pnand %p2255_p0, %p2243_p9  ;;  %p2264_p4 = por %p2263_p1, %p2262_p6 }
  0x1d   : > { %p2258_p3 = pneg %p2257_p2 }
  0x1f   : > { %p2265_p5 = pnand %p2264_p4, %p2258_p3 }
  0x21   : > { %2268 = shalt.err (!%p2265_p5)
}
  0x22   : > { %s2340_s30 = smov 192   ;;  %s2341_s3 = smov 12  }
  0x23   : > { %2035 = dma.hbm_to_vmem [thread:$0]  (!%p2400_p7), %s2884_s1, 9216, %s107_s17, [#allocation5], %s2340_s30, %s2340_s30, %s2341_s3  }
  0x24   : > { %p21_p8 = scmp.eq.s32.totalorder %s20_s21, 0  ;;  %p30_p9 = scmp.ne.s32.totalorder %s2333_s11, %s2329_s10 }
  0x25   : > { %p31_p1 = scmp.eq.s32.totalorder %s2337_s12, 0  ;;  %p2041_p4 = scmp.lt.s32.totalorder %s2337_s12, 2 }
  0x26   : > { %s2431_s6 = scalar_select %p21_p8, %s2333_s11, %s23_s20  }
  0x27   : > { %p32_p5 = por %p31_p1, %p30_p9  ;;  %s120_s7 = sand.u32 1, %s2333_s11  }
  0x28   : > { %s2023_s8 = smul.u32 384, %s120_s7  ;;  %s2274_s26 = scalar_lea.hbm %s2883_s0, 12288 }
  0x29   : > { %s2024_s9 = smul.u32 6144, %s2337_s12  ;;  %p2435_p10 = pnand %p2041_p4, %p32_p5 }
  0x2a   : > { %s124_s20 = scalar_lea.vmem [#allocation2], %s2023_s8  ;;  %s2446_s12 = scalar_lea.sflag [#allocation3], %s120_s7 }
  0x2b   : > { %s2442_s17 = scalar_lea.hbm %s2883_s0, %s2024_s9  ;;  %s131_s21 = sshll.u32 %s124_s20, 4  ;;  %s2444_s21 = int_to_ptr.vmem [resolvable:$true] %s131_s21 }
  0x2c   : > { %s2269_s23 = scalar_lea.hbm %s2442_s17, 6144  ;;  %p2271_p11 = pneg %p2435_p10 }
  0x2d   : > { %p2270_p7 = scmp.ne.s32.totalorder %s2442_s17, %s2269_s23  ;;  %p2275_p0 = scmp.lt.u32.totalorder %s2442_s17, %s2883_s0 }
  0x2e   : > { %p2276_p2 = scmp.lt.u32.totalorder %s2274_s26, %s2269_s23  ;;  %p2278_p6 = scmp.lt.u32.totalorder %s2269_s23, %s2442_s17 }
  0x2f   : > { %p2272_p12 = pnand %p2271_p11, %p2270_p7 }
  0x30   : > { %p2277_p3 = por %p2276_p2, %p2275_p0 }
  0x31   : > { %p2273_p13 = pneg %p2272_p12 }
  0x32   : > { %p2279_p8 = por %p2278_p6, %p2277_p3 }
  0x34   : > { %p2280_p9 = pnand %p2279_p8, %p2273_p13 }
  0x36   : > { %2283 = shalt.err (!%p2280_p9)
}
  0x37   : > { %s2284_s29 = scalar_lea.vmem %s2444_s21, 6144  ;;  %s2342_s30 = smov [#allocation2]  }
  0x38   : > { %p2285_p1 = scmp.ne.s32.totalorder %s2444_s21, %s2284_s29  ;;  %s2289_s3 = sshll.u32 %s2342_s30, 4  ;;  %s2290_s3 = int_to_ptr.vmem [resolvable:$false] %s2289_s3 }
  0x39   : > { %s2291_s4 = scalar_lea.vmem %s2290_s3, 12288  ;;  %p2292_p7 = scmp.lt.s32.totalorder %s2444_s21, %s2290_s3 }
  0x3a   : > { %p2287_p4 = pnand %p2285_p1, %p2271_p11  ;;  %p2293_p12 = scmp.lt.s32.totalorder %s2291_s4, %s2284_s29 }
  0x3c   : > { %p2288_p5 = pneg %p2287_p4  ;;  %p2294_p0 = por %p2293_p12, %p2292_p7 }
  0x3e   : > { %p2295_p2 = pnand %p2294_p0, %p2288_p5 }
  0x40   : > { %2298 = shalt.err (!%p2295_p2)
}
  0x41   : > { %s2343_s5 = smov 384   ;;  %s2344_s7 = smov 24  }
  0x42   : > { %2039 = dma.hbm_to_vmem [thread:$0]  (!%p2435_p10), %s2442_s17, 6144, %s2444_s21, %s2446_s12, %s2343_s5, %s2343_s5, %s2344_s7  }
  0x43   : > { %p2893_p11 = scmp.ne.s32.totalorder %s2890_s15, 0 }
  0x44   : > { %s145_s8 = sand.u32 (!%p2893_p11), 1, %s2329_s10   ;;  %p2894_p13 = scmp.ne.s32.totalorder (!%p2893_p11), %s2889_s14, 0 }
  0x45   : > { %143 = sbr.rel (%p2893_p11) target bundleno = 1269 (0x4f5), region = 28  ;;  %s146_s22 = scalar_lea.sflag (!%p2893_p11), [#allocation3], %s145_s8 }
  0x46   : > { %s2025_s9 = smul.u32 (!%p2893_p11), 384, %s145_s8 }
  0x48   : > { %s2477_s18 = scalar_lea.vmem (!%p2893_p11), [#allocation2], %s2025_s9 }
  0x4c   : > { %2316 = dma.done.wait (%p2894_p13), %s146_s22, 6144  }
  0x4d   : > { %2318 = vsyncadd (%p2894_p13), %s146_s22, 4294961152  ;;  %p2895_p3 = scmp.eq.s32.totalorder %s2380_s13, 0 }
  0x4f   : > { %2320 = dma.done.wait (%p2895_p3), [#allocation5], 9216   ;;  %p2896_p10 = pmov %p2895_p3 }
  0x50   : > { %v2081_v0 = vld [vmem:[#allocation4 + $0x4] ss:$12 sps:$4 sm:$0xff]   ;;  %v2083_v1 = vld [vmem:[#allocation4] ss:$12 sps:$4 sm:$0xff]   ;;  %v2084_v2 = vld [vmem:[#allocation4 + $0x1c] ss:$12 sps:$4 sm:$0xff]  }
  0x51   : > { %2322 = vsyncadd (%p2896_p10), [#allocation5], 4294958080  ;;  %732 = vmatprep.subr.bf16.mxu0 %v2081_v0  ;;  %v2086_v3 = vld [vmem:[#allocation4 + $0x18] ss:$12 sps:$4 sm:$0xff]   ;;  %v2087_v4 = vld [vmem:[#allocation4 + $0x34] ss:$12 sps:$4 sm:$0xff]  }
  0x52   : > { %733 = vmatpush1.bf16.msra.mxu0 %v2083_v1  ;;  %v2089_v5 = vld [vmem:[#allocation4 + $0x30] ss:$12 sps:$4 sm:$0xff]   ;;  %v2090_v6 = vld [vmem:[#allocation4 + $0x4c] ss:$12 sps:$4 sm:$0xff]   ;;  %v2092_v7 = vld [vmem:[#allocation4 + $0x48] ss:$12 sps:$4 sm:$0xff]  }
  0x53   : > { %734 = vmatprep.subr.bf16.mxu0 %v2084_v2  ;;  %v2093_v8 = vld [vmem:[#allocation4 + $0x64] ss:$12 sps:$4 sm:$0xff]   ;;  %v2095_v9 = vld [vmem:[#allocation4 + $0x60] ss:$12 sps:$4 sm:$0xff]   ;;  %v2096_v10 = vld [vmem:[#allocation4 + $0x7c] ss:$12 sps:$4 sm:$0xff]  }
  0x54   : > { %v2098_v11 = vld [vmem:[#allocation4 + $0x78] ss:$12 sps:$4 sm:$0xff]   ;;  %v2099_v12 = vld [vmem:[#allocation4 + $0x94] ss:$12 sps:$4 sm:$0xff]   ;;  %v181_v13 = vld [vmem:[%s2477_s18 + $0x8] sm:$0xff]  ;;  %p174_p6 = scmp.lt.s32.totalorder %s2380_s13, 1 }
  0x55   : > { %v184_v14 = vld [vmem:[%s2477_s18 + $0x20] sm:$0xff]  ;;  %v2101_v16 = vld [vmem:[#allocation4 + $0x90] ss:$12 sps:$4 sm:$0xff]   ;;  %v2102_v17 = vld [vmem:[#allocation4 + $0xac] ss:$12 sps:$4 sm:$0xff]  }
  0x56   : > { %735 = vmatpush1.bf16.msra.mxu0 %v2086_v3  ;;  %v229_v15 = vpack.c.bf16 %v184_v14, %v181_v13  ;;  %v2104_v18 = vld [vmem:[#allocation4 + $0xa8] ss:$12 sps:$4 sm:$0xff]   ;;  %v2105_v19 = vld [vmem:[#allocation4 + $0xc4] ss:$12 sps:$4 sm:$0xff]   ;;  %v2107_v20 = vld [vmem:[#allocation4 + $0xc0] ss:$12 sps:$4 sm:$0xff]  }
  0x57   : > { %736 = vmatprep.subr.bf16.mxu0 %v2087_v4  ;;  %v2108_v21 = vld [vmem:[#allocation4 + $0xdc] ss:$12 sps:$4 sm:$0xff]   ;;  %v2110_v22 = vld [vmem:[#allocation4 + $0xd8] ss:$12 sps:$4 sm:$0xff]   ;;  %v2111_v23 = vld [vmem:[#allocation4 + $0xf4] ss:$12 sps:$4 sm:$0xff]  }
  0x58   : > { %764 = vmatprep.mubr.bf16.mxu0 %v229_v15  ;;  %990 = vmatprep.mubr.bf16.mxu1 %v229_v15  ;;  %v2113_v24 = vld [vmem:[#allocation4 + $0xf0] ss:$12 sps:$4 sm:$0xff]   ;;  %v2114_v25 = vld [vmem:[#allocation4 + $0x10c] ss:$12 sps:$4 sm:$0xff]   ;;  %v2116_v26 = vld [vmem:[#allocation4 + $0x108] ss:$12 sps:$4 sm:$0xff]  }
  0x59   : > { %v2117_v27 = vld [vmem:[#allocation4 + $0x124] ss:$12 sps:$4 sm:$0xff]   ;;  %v2119_v28 = vld [vmem:[#allocation4 + $0x120] ss:$12 sps:$4 sm:$0xff]   ;;  %v2120_v29 = vld [vmem:[#allocation4 + $0x13c] ss:$12 sps:$4 sm:$0xff]  }
  0x5a   : > { %737 = vmatpush1.bf16.msra.mxu0 %v2089_v5  ;;  %v2122_v30 = vld [vmem:[#allocation4 + $0x138] ss:$12 sps:$4 sm:$0xff]   ;;  %v2123_v31 = vld [vmem:[#allocation4 + $0x154] ss:$12 sps:$4 sm:$0xff]   ;;  %v2125_v32 = vld [vmem:[#allocation4 + $0x150] ss:$12 sps:$4 sm:$0xff]  }
  0x5b   : > { %738 = vmatprep.subr.bf16.mxu0 %v2090_v6  ;;  %v2126_v33 = vld [vmem:[#allocation4 + $0x16c] ss:$12 sps:$4 sm:$0xff]   ;;  %v2153_v34 = vld [vmem:[#allocation4 + $0xc8] ss:$12 sps:$4 sm:$0xff]   ;;  %v180_v39 = vld [vmem:[%s2477_s18] sm:$0xff]  ;;  %s2902_s13 = smov (!%p174_p6, %s2380_s13), 1 }
  0x5c   : > { %v2154_v35 = vld [vmem:[#allocation4 + $0x8] ss:$12 sps:$4 sm:$0xff]   ;;  %1767 = vmatprep.subr.bf16.mxu1 %v2153_v34  ;;  %v2155_v37 = vld [vmem:[#allocation4 + $0xe0] ss:$12 sps:$4 sm:$0xff]   ;;  %v183_v40 = vld [vmem:[%s2477_s18 + $0x18] sm:$0xff]  ;;  %s1766_s14 = sshll.u32 %s2902_s13, 7 }
  0x5d   : > { %v2128_v36 = vld [vmem:[#allocation4 + $0x168] ss:$12 sps:$4 sm:$0xff]   ;;  %1768 = vmatpush3.bf16.msra.mxu1 %v2154_v35  ;;  %v2156_v38 = vld [vmem:[#allocation4 + $0x20] ss:$12 sps:$4 sm:$0xff]   ;;  %v2157_v41 = vld [vmem:[#allocation4 + $0xf8] ss:$12 sps:$4 sm:$0xff]   ;;  %v2493_v46 = vpack.c.bf16 %v183_v40, %v180_v39  ;;  %s2836_s17 = scalar_lea.vmem %s2885_s2, %s1766_s14 }
  0x5e   : > { %739 = vmatpush1.bf16.msra.mxu0 %v2092_v7  ;;  %v2131_v42 = vld [vmem:[#allocation4 + $0x184] ss:$12 sps:$4 sm:$0xff]   ;;  %v187_v43 = vld [vmem:[%s2477_s18 + $0x38] sm:$0xff]  ;;  %1769 = vmatprep.subr.bf16.mxu1 %v2155_v37  ;;  %v2129_v45 = vld [vmem:[#allocation4 + $0x180] ss:$12 sps:$4 sm:$0xff]  }
  0x5f   : > { %740 = vmatprep.subr.bf16.mxu0 %v2093_v8  ;;  %v190_v44 = vld [vmem:[%s2477_s18 + $0x50] sm:$0xff]  ;;  %v2158_v47 = vld [vmem:[#allocation4 + $0x38] ss:$12 sps:$4 sm:$0xff]   ;;  %v2134_v49 = vld [vmem:[#allocation4 + $0x19c] ss:$12 sps:$4 sm:$0xff]  }
  0x60   : > { %v2495_v48 = vpack.c.bf16 %v190_v44, %v187_v43  ;;  %v2159_v50 = vld [vmem:[#allocation4 + $0x110] ss:$12 sps:$4 sm:$0xff]   ;;  %v189_v52 = vld [vmem:[%s2477_s18 + $0x48] sm:$0xff]  ;;  %v2132_v53 = vld [vmem:[#allocation4 + $0x198] ss:$12 sps:$4 sm:$0xff]  }
  0x61   : > { %1770 = vmatpush3.bf16.msra.mxu1 %v2156_v38  ;;  %v186_v51 = vld [vmem:[%s2477_s18 + $0x30] sm:$0xff]  ;;  %v193_v54 = vld [vmem:[%s2477_s18 + $0x68] sm:$0xff]  ;;  %v196_v55 = vld [vmem:[%s2477_s18 + $0x80] sm:$0xff] }
  0x62   : > { %741 = vmatpush1.bf16.msra.mxu0 %v2095_v9  ;;  %1771 = vmatprep.subr.bf16.mxu1 %v2157_v41  ;;  %v2160_v56 = vld [vmem:[#allocation4 + $0x50] ss:$12 sps:$4 sm:$0xff]   ;;  %v2161_v57 = vld [vmem:[#allocation4 + $0x128] ss:$12 sps:$4 sm:$0xff]   ;;  %v2503_v59 = vpack.c.bf16 %v189_v52, %v186_v51  ;;  %v2505_v61 = vpack.c.bf16 %v196_v55, %v193_v54  ;;  %v2140_v63 = vld [vmem:[#allocation4 + $0x1cc] ss:$12 sps:$4 sm:$0xff]  }
  0x63   : > { %742 = vmatprep.subr.bf16.mxu0 %v2096_v10  ;;  %v2137_v58 = vld [vmem:[#allocation4 + $0x1b4] ss:$12 sps:$4 sm:$0xff]   ;;  %v2135_v62 = vld [vmem:[#allocation4 + $0x1b0] ss:$12 sps:$4 sm:$0xff]   ;;  %v2165_v5 = vld [vmem:[#allocation4 + $0x158] ss:$12 sps:$4 sm:$0xff]  }
  0x64   : > { %v2162_v60 = vld [vmem:[#allocation4 + $0x68] ss:$12 sps:$4 sm:$0xff]   ;;  %v2163_v0 = vld [vmem:[#allocation4 + $0x140] ss:$12 sps:$4 sm:$0xff]   ;;  %v195_v3 = vld [vmem:[%s2477_s18 + $0x78] sm:$0xff] }
  0x65   : > { %1772 = vmatpush3.bf16.msra.mxu1 %v2158_v47  ;;  %v192_v1 = vld [vmem:[%s2477_s18 + $0x60] sm:$0xff]  ;;  %v2138_v4 = vld [vmem:[#allocation4 + $0x1c8] ss:$12 sps:$4 sm:$0xff]   ;;  %v199_v6 = vld [vmem:[%s2477_s18 + $0x98] sm:$0xff] }
  0x66   : > { %743 = vmatpush1.bf16.msra.mxu0 %v2098_v11  ;;  %1773 = vmatprep.subr.bf16.mxu1 %v2159_v50  ;;  %v2164_v2 = vld [vmem:[#allocation4 + $0x80] ss:$12 sps:$4 sm:$0xff]   ;;  %v202_v7 = vld [vmem:[%s2477_s18 + $0xb0] sm:$0xff]  ;;  %v2513_v9 = vpack.c.bf16 %v195_v3, %v192_v1  ;;  %v2166_v10 = vld [vmem:[#allocation4 + $0x98] ss:$12 sps:$4 sm:$0xff]  }
  0x67   : > { %744 = vmatprep.subr.bf16.mxu0 %v2099_v12  ;;  %v2143_v8 = vld [vmem:[#allocation4 + $0x1e4] ss:$12 sps:$4 sm:$0xff]   ;;  %v2515_v11 = vpack.c.bf16 %v202_v7, %v199_v6  ;;  %v2141_v12 = vld [vmem:[#allocation4 + $0x1e0] ss:$12 sps:$4 sm:$0xff]   ;;  %v2146_v13 = vld [vmem:[#allocation4 + $0x1fc] ss:$12 sps:$4 sm:$0xff]  }
  0x68   : > { %v2167_v14 = vld [vmem:[#allocation4 + $0x170] ss:$12 sps:$4 sm:$0xff]   ;;  %v213_v38 = vld [vmem:[%s2477_s18 + $0x108] sm:$0xff]  ;;  %v220_v40 = vld [vmem:[%s2477_s18 + $0x140] sm:$0xff] }
  0x69   : > { %1774 = vmatpush3.bf16.msra.mxu1 %v2160_v56  ;;  %v198_v15 = vld [vmem:[%s2477_s18 + $0x90] sm:$0xff]  ;;  %v217_v39 = vld [vmem:[%s2477_s18 + $0x128] sm:$0xff]  ;;  %v223_v47 = vld [vmem:[%s2477_s18 + $0x158] sm:$0xff]  ;;  %v2345_v56 = vmov 0  }
  0x6a   : > { %745 = vmatpush1.bf16.msra.mxu0 %v2101_v16  ;;  %1775 = vmatprep.subr.bf16.mxu1 %v2161_v57  ;;  %v2168_v16 = vld [vmem:[#allocation4 + $0xb0] ss:$12 sps:$4 sm:$0xff]   ;;  %v2173_v41 = vld [vmem:[#allocation4 + $0x1e8] ss:$12 sps:$4 sm:$0xff]   ;;  %v247_v43 = vpack.c.bf16 %v220_v40, %v217_v39  ;;  %v2174_v44 = vld [vmem:[#allocation4 + $0x200] ss:$12 sps:$4 sm:$0xff]  }
  0x6b   : > { %746 = vmatprep.subr.bf16.mxu0 %v2102_v17  ;;  %v201_v17 = vld [vmem:[%s2477_s18 + $0xa8] sm:$0xff]  ;;  %v210_v37 = vld [vmem:[%s2477_s18 + $0xf0] sm:$0xff]  ;;  %v203_v3 = vld [vmem:[%s2477_s18 + $0xb8] sm:$0xff] }
  0x6c   : > { %v2176_v52 = vld [vmem:[#allocation4 + $0x230] ss:$12 sps:$4 sm:$0xff]   ;;  %v225_v54 = vld [vmem:[%s2477_s18 + $0x168] sm:$0xff] }
  0x6d   : > { %1776 = vmatpush3.bf16.msra.mxu1 %v2162_v60  ;;  %v182_v57 = vld [vmem:[%s2477_s18 + $0x10] sm:$0xff]  ;;  %v188_v60 = vld [vmem:[%s2477_s18 + $0x40] sm:$0xff]  ;;  %v209_v6 = vld [vmem:[%s2477_s18 + $0xe8] sm:$0xff] }
  0x6e   : > { %747 = vmatpush1.bf16.msra.mxu0 %v2104_v18  ;;  %1777 = vmatprep.subr.bf16.mxu1 %v2163_v0  ;;  %v2144_v18 = vld [vmem:[#allocation4 + $0x1f8] ss:$12 sps:$4 sm:$0xff]   ;;  %v197_v0 = vld [vmem:[%s2477_s18 + $0x88] sm:$0xff] }
  0x6f   : > { %748 = vmatprep.subr.bf16.mxu0 %v2105_v19  ;;  %v2169_v19 = vld [vmem:[#allocation4 + $0x188] ss:$12 sps:$4 sm:$0xff]  }
  0x71   : > { %1778 = vmatpush3.bf16.msra.mxu1 %v2164_v2  ;;  %v200_v2 = vld [vmem:[%s2477_s18 + $0xa0] sm:$0xff] }
  0x72   : > { %749 = vmatpush1.bf16.msra.mxu0 %v2107_v20  ;;  %1779 = vmatprep.subr.bf16.mxu1 %v2165_v5  ;;  %v205_v20 = vld [vmem:[%s2477_s18 + $0xc8] sm:$0xff]  ;;  %v206_v5 = vld [vmem:[%s2477_s18 + $0xd0] sm:$0xff] }
  0x73   : > { %750 = vmatprep.subr.bf16.mxu0 %v2108_v21  ;;  %v208_v21 = vld [vmem:[%s2477_s18 + $0xe0] sm:$0xff]  ;;  %v242_v7 = vpack.c.bf16 %v209_v6, %v206_v5 }
  0x75   : > { %1780 = vmatpush3.bf16.msra.mxu1 %v2166_v10  ;;  %v218_v10 = vld [vmem:[%s2477_s18 + $0x130] sm:$0xff] }
  0x76   : > { %751 = vmatpush1.bf16.msra.mxu0 %v2110_v22  ;;  %v2149_v22 = vld [vmem:[#allocation4 + $0x214] ss:$12 sps:$4 sm:$0xff]   ;;  %1781 = vmatprep.subr.bf16.mxu1 %v2167_v14 }
  0x77   : > { %752 = vmatprep.subr.bf16.mxu0 %v2111_v23  ;;  %v237_v23 = vpack.c.bf16 %v201_v17, %v198_v15  ;;  %v224_v14 = vld [vmem:[%s2477_s18 + $0x160] sm:$0xff]  ;;  %v227_v15 = vld [vmem:[%s2477_s18 + $0x178] sm:$0xff] }
  0x79   : > { %1782 = vmatpush3.bf16.msra.mxu1 %v2168_v16  ;;  %v251_v16 = vpack.c.bf16 %v227_v15, %v224_v14 }
  0x7a   : > { %753 = vmatpush1.bf16.msra.mxu0 %v2113_v24  ;;  %v241_v24 = vpack.c.bf16 %v208_v21, %v205_v20  ;;  %1879 = vmatprep.subr.bf16.mxu1 %v2169_v19 }
  0x7b   : > { %754 = vmatprep.subr.bf16.mxu0 %v2114_v25  ;;  %v2147_v25 = vld [vmem:[#allocation4 + $0x210] ss:$12 sps:$4 sm:$0xff]  }
  0x7c   : > { %991 = vmatmul.mubr.bf16.vlgmr.msra.gmra.mrb[0].mxu1 %v2493_v46 }
  0x7d   : > { %998 = vmatprep.mubr.bf16.mxu1 %v2495_v48  ;;  %1880 = vmatpush3.bf16.msra.mxu1 %v2169_v19 }
  0x7e   : > { %755 = vmatpush1.bf16.msra.mxu0 %v2116_v26  ;;  %v2152_v26 = vld [vmem:[#allocation4 + $0x22c] ss:$12 sps:$4 sm:$0xff]  }
  0x7f   : > { %756 = vmatprep.subr.bf16.mxu0 %v2117_v27  ;;  %v2170_v27 = vld [vmem:[#allocation4 + $0x1a0] ss:$12 sps:$4 sm:$0xff]  }
  0x80   : > { %1881 = vmatprep.subr.bf16.mxu1 %v2170_v27 }
  0x81   : > { %1882 = vmatpush3.bf16.msra.mxu1 %v2170_v27 }
  0x82   : > { %757 = vmatpush1.bf16.msra.mxu0 %v2119_v28  ;;  %v204_v28 = vld [vmem:[%s2477_s18 + $0xc0] sm:$0xff] }
  0x83   : > { %758 = vmatprep.subr.bf16.mxu0 %v2120_v29  ;;  %v207_v29 = vld [vmem:[%s2477_s18 + $0xd8] sm:$0xff] }
  0x84   : > { %v240_v34 = vpack.c.bf16 %v207_v29, %v204_v28  ;;  %999 = vmatmul.mubr.bf16.gmra.mrb[4].mxu1 %v2503_v59 }
  0x85   : > { %1006 = vmatprep.mubr.bf16.mxu1 %v2505_v61 }
  0x86   : > { %759 = vmatpush1.bf16.msra.mxu0 %v2122_v30  ;;  %v2150_v30 = vld [vmem:[#allocation4 + $0x228] ss:$12 sps:$4 sm:$0xff]  }
  0x87   : > { %760 = vmatprep.subr.bf16.mxu0 %v2123_v31  ;;  %v211_v31 = vld [vmem:[%s2477_s18 + $0xf8] sm:$0xff] }
  0x8a   : > { %761 = vmatpush1.bf16.msra.mxu0 %v2125_v32  ;;  %v214_v32 = vld [vmem:[%s2477_s18 + $0x110] sm:$0xff] }
  0x8b   : > { %762 = vmatprep.subr.bf16.mxu0 %v2126_v33  ;;  %v2171_v33 = vld [vmem:[#allocation4 + $0x1b8] ss:$12 sps:$4 sm:$0xff]   ;;  %v244_v35 = vpack.c.bf16 %v214_v32, %v211_v31 }
  0x8c   : > { %1883 = vmatprep.subr.bf16.mxu1 %v2171_v33  ;;  %1007 = vmatmul.mubr.bf16.gmra.mrb[8].mxu1 %v2513_v9 }
  0x8d   : > { %1884 = vmatpush3.bf16.msra.mxu1 %v2171_v33  ;;  %1014 = vmatprep.mubr.bf16.mxu1 %v2515_v11 }
  0x8e   : > { %763 = vmatpush1.bf16.msra.mxu0 %v2128_v36  ;;  %v2172_v36 = vld [vmem:[#allocation4 + $0x1d0] ss:$12 sps:$4 sm:$0xff]  }
  0x8f   : > { %845 = vmatprep.subr.bf16.mxu0 %v2131_v42  ;;  %1885 = vmatprep.subr.bf16.mxu1 %v2172_v36  ;;  %v243_v42 = vpack.c.bf16 %v213_v38, %v210_v37 }
  0x91   : > { %765 = vmatmul.mubr.bf16.vlgmr.msra.gmra.mrb[0].mxu0 %v2493_v46  ;;  %1886 = vmatpush3.bf16.msra.mxu1 %v2172_v36  ;;  %v219_v46 = vld [vmem:[%s2477_s18 + $0x138] sm:$0xff] }
  0x92   : > { %846 = vmatpush1.bf16.msra.mxu0 %v2129_v45  ;;  %774 = vmatprep.mubr.bf16.mxu0 %v2495_v48  ;;  %v216_v45 = vld [vmem:[%s2477_s18 + $0x120] sm:$0xff]  ;;  %v226_v48 = vld [vmem:[%s2477_s18 + $0x170] sm:$0xff] }
  0x93   : > { %847 = vmatprep.subr.bf16.mxu0 %v2134_v49  ;;  %1887 = vmatprep.subr.bf16.mxu1 %v2173_v41  ;;  %v2175_v49 = vld [vmem:[#allocation4 + $0x218] ss:$12 sps:$4 sm:$0xff]   ;;  %v246_v50 = vpack.c.bf16 %v219_v46, %v216_v45  ;;  %v250_v51 = vpack.c.bf16 %v226_v48, %v223_v47 }
  0x94   : > { %1015 = vmatmul.mubr.bf16.gmra.mrb[12].mxu1 %v237_v23 }
  0x95   : > { %1888 = vmatpush3.bf16.msra.mxu1 %v2173_v41  ;;  %1022 = vmatprep.mubr.bf16.mxu1 %v241_v24 }
  0x96   : > { %848 = vmatpush1.bf16.msra.mxu0 %v2132_v53  ;;  %1889 = vmatprep.subr.bf16.mxu1 %v2174_v44  ;;  %v222_v53 = vld [vmem:[%s2477_s18 + $0x150] sm:$0xff] }
  0x97   : > { %849 = vmatprep.subr.bf16.mxu0 %v2137_v58  ;;  %v249_v55 = vpack.c.bf16 %v225_v54, %v222_v53  ;;  %v185_v58 = vld [vmem:[%s2477_s18 + $0x28] sm:$0xff] }
  0x99   : > { %775 = vmatmul.mubr.bf16.gmra.mrb[4].mxu0 %v2503_v59  ;;  %1890 = vmatpush3.bf16.msra.mxu1 %v2174_v44  ;;  %v230_v59 = vpack.c.bf16 %v185_v58, %v182_v57 }
  0x9a   : > { %784 = vmatprep.mubr.bf16.mxu0 %v2505_v61  ;;  %850 = vmatpush1.bf16.msra.mxu0 %v2135_v62  ;;  %v191_v61 = vld [vmem:[%s2477_s18 + $0x58] sm:$0xff] }
  0x9b   : > { %851 = vmatprep.subr.bf16.mxu0 %v2140_v63  ;;  %1891 = vmatprep.subr.bf16.mxu1 %v2175_v49  ;;  %v233_v62 = vpack.c.bf16 %v191_v61, %v188_v60  ;;  %v194_v63 = vld [vmem:[%s2477_s18 + $0x70] sm:$0xff] }
  0x9c   : > { %1023 = vmatmul.mubr.bf16.gmra.mrb[16].mxu1 %v240_v34  ;;  %v236_v1 = vpack.c.bf16 %v197_v0, %v194_v63 }
  0x9d   : > { %1892 = vmatpush3.bf16.msra.mxu1 %v2175_v49  ;;  %1030 = vmatprep.mubr.bf16.mxu1 %v244_v35 }
  0x9e   : > { %852 = vmatpush1.bf16.msra.mxu0 %v2138_v4  ;;  %1893 = vmatprep.subr.bf16.mxu1 %v2176_v52  ;;  %v239_v4 = vpack.c.bf16 %v203_v3, %v200_v2 }
  0x9f   : > { %853 = vmatprep.subr.bf16.mxu0 %v2143_v8  ;;  %v212_v8 = vld [vmem:[%s2477_s18 + $0x100] sm:$0xff] }
  0xa1   : > { %785 = vmatmul.mubr.bf16.gmra.mrb[8].mxu0 %v2513_v9  ;;  %1894 = vmatpush3.bf16.msra.mxu1 %v2176_v52  ;;  %v215_v9 = vld [vmem:[%s2477_s18 + $0x118] sm:$0xff] }
  0xa2   : > { %794 = vmatprep.mubr.bf16.mxu0 %v2515_v11  ;;  %854 = vmatpush1.bf16.msra.mxu0 %v2141_v12  ;;  %v221_v11 = vld [vmem:[%s2477_s18 + $0x148] sm:$0xff]  ;;  %v245_v12 = vpack.c.bf16 %v215_v9, %v212_v8 }
  0xa3   : > { %855 = vmatprep.subr.bf16.mxu0 %v2146_v13  ;;  %v248_v13 = vpack.c.bf16 %v221_v11, %v218_v10 }
  0xa4   : > { %1031 = vmatmul.mubr.bf16.gmra.mrb[20].mxu1 %v243_v42 }
  0xa5   : > { %1038 = vmatprep.mubr.bf16.mxu1 %v247_v43 }
  0xa6   : > { %856 = vmatpush1.bf16.msra.mxu0 %v2144_v18 }
  0xa7   : > { %857 = vmatprep.subr.bf16.mxu0 %v2149_v22 }
  0xa9   : > { %795 = vmatmul.mubr.bf16.gmra.mrb[12].mxu0 %v237_v23 }
  0xaa   : > { %804 = vmatprep.mubr.bf16.mxu0 %v241_v24  ;;  %858 = vmatpush1.bf16.msra.mxu0 %v2147_v25 }
  0xab   : > { %859 = vmatprep.subr.bf16.mxu0 %v2152_v26 }
  0xac   : > { %1039 = vmatmul.mubr.bf16.gmra.mrb[24].mxu1 %v246_v50 }
  0xad   : > { %1046 = vmatprep.mubr.bf16.mxu1 %v250_v51 }
  0xae   : > { %860 = vmatpush1.bf16.msra.mxu0 %v2150_v30 }
  0xb1   : > { %805 = vmatmul.mubr.bf16.gmra.mrb[16].mxu0 %v240_v34 }
  0xb2   : > { %814 = vmatprep.mubr.bf16.mxu0 %v244_v35 }
  0xb4   : > { %1047 = vmatmul.mubr.bf16.gmra.mrb[28].mxu1 %v249_v55 }
  0xb5   : > { %1895 = vmatprep.mubr.bf16.mxu1 %v230_v59 }
  0xb9   : > { %815 = vmatmul.mubr.bf16.gmra.mrb[20].mxu0 %v243_v42 }
  0xba   : > { %824 = vmatprep.mubr.bf16.mxu0 %v247_v43 }
  0xbc   : > { %1896 = vmatmul.mubr.bf16.vlgmr.msra.gmra.mrb[32].mxu1 %v233_v62 }
  0xbd   : > { %1899 = vmatprep.mubr.bf16.mxu1 %v236_v1 }
  0xc1   : > { %825 = vmatmul.mubr.bf16.gmra.mrb[24].mxu0 %v246_v50 }
  0xc2   : > { %834 = vmatprep.mubr.bf16.mxu0 %v250_v51 }
  0xc4   : > { %1900 = vmatmul.mubr.bf16.gmra.mrb[36].mxu1 %v239_v4 }
  0xc5   : > { %1903 = vmatprep.mubr.bf16.mxu1 %v242_v7 }
  0xc9   : > { %835 = vmatmul.mubr.bf16.gmra.mrb[28].mxu0 %v249_v55 }
  0xca   : > { %877 = vmatprep.mubr.bf16.mxu0 %v2345_v56 }
  0xcc   : > { %1904 = vmatmul.mubr.bf16.gmra.mrb[40].mxu1 %v245_v12 }
  0xcd   : > { %1907 = vmatprep.mubr.bf16.mxu1 %v248_v13 }
  0xd1   : > { %878 = vmatmul.mubr.bf16.vlgmr.msra.gmra.mrb[0].mxu0 %v230_v59 }
  0xd2   : > { %887 = vmatprep.mubr.bf16.mxu0 %v2345_v56 }
  0xd4   : > { %1908 = vmatmul.mubr.bf16.gmra.mrb[44].mxu1 %v251_v16 }
  0xd9   : > { %888 = vmatmul.mubr.bf16.gmra.mrb[4].mxu0 %v233_v62 }
  0xda   : > { %897 = vmatprep.mubr.bf16.mxu0 %v2345_v56 }
  0xe1   : > { %898 = vmatmul.mubr.bf16.gmra.mrb[8].mxu0 %v236_v1 }
  0xe2   : > { %907 = vmatprep.mubr.bf16.mxu0 %v2345_v56 }
  0xe9   : > { %908 = vmatmul.mubr.bf16.gmra.mrb[12].mxu0 %v239_v4 }
  0xea   : > { %917 = vmatprep.mubr.bf16.mxu0 %v2345_v56 }
  0xf1   : > { %918 = vmatmul.mubr.bf16.gmra.mrb[16].mxu0 %v242_v7 }
  0xf2   : > { %927 = vmatprep.mubr.bf16.mxu0 %v2345_v56 }
  0xf9   : > { %928 = vmatmul.mubr.bf16.gmra.mrb[20].mxu0 %v245_v12 }
  0xfa   : > { %937 = vmatprep.mubr.bf16.mxu0 %v2345_v56 }
 0x101   : > { %938 = vmatmul.mubr.bf16.gmra.mrb[24].mxu0 %v248_v13 }
 0x102   : > { %947 = vmatprep.mubr.bf16.mxu0 %v2345_v56 }
 0x109   : > { %948 = vmatmul.mubr.bf16.gmra.mrb[28].mxu0 %v251_v16 }
 0x14f   : > { %v1783_v17 = vpop.f32.mrb[0].mxu1 }
 0x150   : > { %v1784_v18 = vpop.f32.mrb[1].mxu1 }
 0x151   : > { %v2559_v19 = vadd.f32 %v1784_v18, %v1783_v17  ;;  %v1786_v20 = vpop.f32.mrb[2].mxu1 }
 0x152   : > { %v1787_v21 = vpop.f32.mrb[3].mxu1 }
 0x153   : > { %v2561_v22 = vadd.f32 %v1787_v21, %v1786_v20 }
 0x157   : > { %v1789_v23 = vpop.f32.mrb[4].mxu1 }
 0x158   : > { %v1790_v24 = vpop.f32.mrb[5].mxu1 }
 0x159   : > { %v2563_v25 = vadd.f32 %v1790_v24, %v1789_v23  ;;  %v1792_v26 = vpop.f32.mrb[6].mxu1 }
 0x15a   : > { %v1793_v27 = vpop.f32.mrb[7].mxu1 }
 0x15b   : > { %v2565_v28 = vadd.f32 %v1793_v27, %v1792_v26 }
 0x15f   : > { %v1795_v29 = vpop.f32.mrb[8].mxu1 }
 0x160   : > { %v1796_v30 = vpop.f32.mrb[9].mxu1 }
 0x161   : > { %v2567_v31 = vadd.f32 %v1796_v30, %v1795_v29  ;;  %v1798_v32 = vpop.f32.mrb[10].mxu1 }
 0x162   : > { %v1799_v33 = vpop.f32.mrb[11].mxu1 }
 0x163   : > { %v2569_v34 = vadd.f32 %v1799_v33, %v1798_v32 }
 0x167   : > { %v1801_v35 = vpop.f32.mrb[12].mxu1 }
 0x168   : > { %v1802_v36 = vpop.f32.mrb[13].mxu1 }
 0x169   : > { %v2571_v37 = vadd.f32 %v1802_v36, %v1801_v35  ;;  %v1804_v38 = vpop.f32.mrb[14].mxu1 }
 0x16a   : > { %v1805_v39 = vpop.f32.mrb[15].mxu1 }
 0x16b   : > { %v2573_v40 = vadd.f32 %v1805_v39, %v1804_v38 }
 0x16f   : > { %v1807_v41 = vpop.f32.mrb[16].mxu1 }
 0x170   : > { %v1808_v42 = vpop.f32.mrb[17].mxu1 }
 0x171   : > { %v2575_v43 = vadd.f32 %v1808_v42, %v1807_v41  ;;  %v1810_v44 = vpop.f32.mrb[18].mxu1 }
 0x172   : > { %v1811_v45 = vpop.f32.mrb[19].mxu1 }
 0x173   : > { %v2577_v46 = vadd.f32 %v1811_v45, %v1810_v44 }
 0x177   : > { %v1813_v47 = vpop.f32.mrb[20].mxu1 }
 0x178   : > { %v1814_v49 = vpop.f32.mrb[21].mxu1 }
 0x179   : > { %v2579_v51 = vadd.f32 %v1814_v49, %v1813_v47  ;;  %v1816_v52 = vpop.f32.mrb[22].mxu1 }
 0x17a   : > { %v1817_v54 = vpop.f32.mrb[23].mxu1 }
 0x17b   : > { %v2581_v57 = vadd.f32 %v1817_v54, %v1816_v52 }
 0x17f   : > { %v1819_v61 = vpop.f32.mrb[24].mxu1 }
 0x180   : > { %v1820_v63 = vpop.f32.mrb[25].mxu1 }
 0x181   : > { %v2583_v1 = vadd.f32 %v1820_v63, %v1819_v61  ;;  %v1822_v2 = vpop.f32.mrb[26].mxu1 }
 0x182   : > { %v1823_v4 = vpop.f32.mrb[27].mxu1 }
 0x183   : > { %v2585_v7 = vadd.f32 %v1823_v4, %v1822_v2 }
 0x187   : > { %v1825_v11 = vpop.f32.mrb[28].mxu1 }
 0x188   : > { %v1826_v13 = vpop.f32.mrb[29].mxu1 }
 0x189   : > { %v2593_v15 = vadd.f32 %v1826_v13, %v1825_v11  ;;  %v1828_v16 = vpop.f32.mrb[30].mxu1 }
 0x18a   : > { %v1829_v18 = vpop.f32.mrb[31].mxu1 }
 0x18b   : > { %v2595_v23 = vadd.f32 %v1829_v18, %v1828_v16 }
 0x18f   : > { %v1897_v29 = vpop.f32.mrb[32].mxu1 }
 0x190   : > { %v1098_v32 = vadd.f32 %v1897_v29, %v2563_v25  ;;  %v1089_v33 = vpop.f32.mrb[33].mxu1 }
 0x191   : > { %v1090_v36 = vadd.f32 %v2559_v19, %v1089_v33  ;;  %v1898_v38 = vpop.f32.mrb[34].mxu1 }
 0x192   : > { %v1101_v41 = vadd.f32 %v1898_v38, %v2565_v28  ;;  %v1092_v42 = vpop.f32.mrb[35].mxu1 }
 0x193   : > { %v1093_v47 = vadd.f32 %v2561_v22, %v1092_v42 }
 0x195   : > { %v2613_v25 = vpack.c.bf16 %v1093_v47, %v1090_v36 }
 0x197   : > { %1943 = vmatprep.subr.bf16.mxu0 %v2613_v25  ;;  %v1901_v28 = vpop.f32.mrb[36].mxu1 }
 0x198   : > { %1944 = vmatpush3.bf16.msra.mxu0 %v2613_v25  ;;  %v1114_v22 = vadd.f32 %v1901_v28, %v2571_v37 }
 0x1a4   : > { %v879_v48 = vpop.f32.mrb[0].mxu0 }
 0x1a5   : > { %v881_v50 = vpop.f32.mrb[1].mxu0 }
 0x1a6   : > { %v883_v53 = vpop.f32.mrb[2].mxu0  ;;  %v1160_v58 = vmul.f32 0.125, %v881_v50  ;;  %v2611_v50 = vpack.c.bf16 %v1101_v41, %v1098_v32 }
 0x1a7   : > { %v1152_v55 = vpack.c.bf16 %v883_v53, %v879_v48  ;;  %v885_v56 = vpop.f32.mrb[3].mxu0  ;;  %v1105_v53 = vpop.f32.mrb[37].mxu1 }
 0x1a8   : > { %v1161_v59 = vmul.f32 0.125, %v885_v56  ;;  %1945 = vmatprep.subr.bf16.mxu0 %v2611_v50  ;;  %v1902_v56 = vpop.f32.mrb[38].mxu1 }
 0x1a9   : > { %1911 = vmatprep.subr.bf16.mxu1 %v1152_v55  ;;  %1946 = vmatpush3.bf16.msra.mxu0 %v2611_v50 }
 0x1aa   : > { %v1176_v60 = vpack.c.bf16 %v1161_v59, %v1160_v58  ;;  %1912 = vmatpush3.bf16.xpose.msra.mxu1 %v1152_v55  ;;  %v1106_v55 = vadd.f32 %v2567_v31, %v1105_v53  ;;  %v1117_v59 = vadd.f32 %v1902_v56, %v2573_v40 }
 0x1ac   : > { %v889_v62 = vpop.f32.mrb[4].mxu0  ;;  %1927 = vmatprep.mubr.bf16.mxu1 %v1176_v60  ;;  %v1108_v60 = vpop.f32.mrb[39].mxu1  ;;  %v2629_v37 = vpack.c.bf16 %v1117_v59, %v1114_v22 }
 0x1ad   : > { %v891_v0 = vpop.f32.mrb[5].mxu0  ;;  %v1109_v63 = vadd.f32 %v2569_v34, %v1108_v60  ;;  %v1905_v40 = vpop.f32.mrb[40].mxu1 }
 0x1ae   : > { %v893_v3 = vpop.f32.mrb[6].mxu0  ;;  %v2587_v8 = vmul.f32 0.125, %v891_v0  ;;  %v1130_v34 = vadd.f32 %v1905_v40, %v2579_v51 }
 0x1af   : > { %v1153_v5 = vpack.c.bf16 %v893_v3, %v889_v62  ;;  %v895_v6 = vpop.f32.mrb[7].mxu0  ;;  %v2631_v3 = vpack.c.bf16 %v1109_v63, %v1106_v55 }
 0x1b0   : > { %v2589_v9 = vmul.f32 0.125, %v895_v6 }
 0x1b1   : > { %1913 = vmatprep.subr.bf16.mxu1 %v1153_v5  ;;  %1947 = vmatprep.subr.bf16.mxu0 %v2631_v3 }
 0x1b2   : > { %v1177_v10 = vpack.c.bf16 %v2589_v9, %v2587_v8  ;;  %1914 = vmatpush3.bf16.xpose.msra.mxu1 %v1153_v5  ;;  %1948 = vmatpush3.bf16.msra.mxu0 %v2631_v3  ;;  %v1121_v5 = vpop.f32.mrb[41].mxu1  ;;  %v1289_v8 = vlaneseq }
 0x1b3   : > { %1949 = vmatprep.subr.bf16.mxu0 %v2629_v37  ;;  %v1122_v11 = vadd.f32 %v2575_v43, %v1121_v5 }
 0x1b4   : > { %v899_v12 = vpop.f32.mrb[8].mxu0  ;;  %v2667_v9 = vshrl.u32 %v1289_v8, 7 }
 0x1b5   : > { %v901_v14 = vpop.f32.mrb[9].mxu0 }
 0x1b6   : > { %v903_v17 = vpop.f32.mrb[10].mxu0  ;;  %v2597_v24 = vmul.f32 0.125, %v901_v14  ;;  %1950 = vmatpush3.bf16.msra.mxu0 %v2629_v37  ;;  %v1296_v63 = vadd.s32 48, %v2667_v9 }
 0x1b7   : > { %v1154_v20 = vpack.c.bf16 %v903_v17, %v899_v12  ;;  %v905_v21 = vpop.f32.mrb[11].mxu0  ;;  %v1906_v12 = vpop.f32.mrb[42].mxu1 }
 0x1b8   : > { %v2599_v26 = vmul.f32 0.125, %v905_v21  ;;  %v1133_v14 = vadd.f32 %v1906_v12, %v2581_v57  ;;  %v1124_v16 = vpop.f32.mrb[43].mxu1 }
 0x1b9   : > { %1915 = vmatprep.subr.bf16.mxu1 %v1154_v20  ;;  %v1909_v43 = vpop.f32.mrb[44].mxu1 }
 0x1ba   : > { %v1178_v27 = vpack.c.bf16 %v2599_v26, %v2597_v24  ;;  %1916 = vmatpush3.bf16.xpose.msra.mxu1 %v1154_v20  ;;  %v1125_v20 = vadd.f32 %v2577_v46, %v1124_v16  ;;  %v1189_v51 = vpack.c.bf16 %v1133_v14, %v1130_v34  ;;  %v1146_v57 = vadd.f32 %v1909_v43, %v2593_v15 }
 0x1bb   : > { %v2670_v24 = vand.u32 127, %v1289_v8  ;;  %v1293_v26 = vadd.s32 24, %v2667_v9 }
 0x1bc   : > { %v909_v30 = vpop.f32.mrb[12].mxu0 }
 0x1bd   : > { %v911_v35 = vpop.f32.mrb[13].mxu0  ;;  %vm1311_vm1 = vcmp.le.s32.totalorder %v2670_v24, %v1293_v26  ;;  %vm1308_vm2 = vcmp.le.s32.totalorder %v2670_v24, %v2667_v9  ;;  %vm1314_vm5 = vcmp.le.s32.totalorder %v2670_v24, %v1296_v63 }
 0x1be   : > { %v913_v39 = vpop.f32.mrb[14].mxu0  ;;  %v2607_v48 = vmul.f32 0.125, %v911_v35  ;;  %v1137_v35 = vpop.f32.mrb[45].mxu1 }
 0x1bf   : > { %v1155_v44 = vpack.c.bf16 %v913_v39, %v909_v30  ;;  %v915_v45 = vpop.f32.mrb[15].mxu0  ;;  %v1188_v30 = vpack.c.bf16 %v1125_v20, %v1122_v11  ;;  %v1138_v46 = vadd.f32 %v2583_v1, %v1137_v35  ;;  %v1910_v38 = vpop.f32.mrb[46].mxu1  ;;  %v1301_v11 = vadd.s32 88, %v2667_v9 }
 0x1c0   : > { %v2609_v49 = vmul.f32 0.125, %v915_v45  ;;  %v1149_v41 = vadd.f32 %v1910_v38, %v2595_v23  ;;  %v1140_v42 = vpop.f32.mrb[47].mxu1  ;;  %v1299_v20 = vadd.s32 72, %v2667_v9  ;;  %v1303_v38 = vadd.s32 104, %v2667_v9 }
 0x1c1   : > { %1917 = vmatprep.subr.bf16.mxu1 %v1155_v44  ;;  %1951 = vmatprep.subr.bf16.mxu0 %v1188_v30  ;;  %v1141_v47 = vadd.f32 %v2585_v7, %v1140_v42  ;;  %vm1319_vm9 = vcmp.le.s32.totalorder %v2670_v24, %v1301_v11  ;;  %v1305_v42 = vadd.s32 120, %v2667_v9 }
 0x1c2   : > { %v1179_v19 = vpack.c.bf16 %v2609_v49, %v2607_v48  ;;  %1918 = vmatpush3.bf16.xpose.msra.mxu1 %v1155_v44  ;;  %1952 = vmatpush3.bf16.msra.mxu0 %v1188_v30  ;;  %v1191_v22 = vpack.c.bf16 %v1149_v41, %v1146_v57  ;;  %vm1317_vm10 = vcmp.le.s32.totalorder %v2670_v24, %v1299_v20 }
 0x1c3   : > { %1953 = vmatprep.subr.bf16.mxu0 %v1189_v51  ;;  %v1190_v15 = vpack.c.bf16 %v1141_v47, %v1138_v46  ;;  %vm1321_vm14 = vcmp.le.s32.totalorder %v2670_v24, %v1303_v38  ;;  %vm1323_vm15 = vcmp.le.s32.totalorder %v2670_v24, %v1305_v42 }
 0x1c4   : > { %v919_v52 = vpop.f32.mrb[16].mxu0 }
 0x1c5   : > { %v921_v54 = vpop.f32.mrb[17].mxu0 }
 0x1c6   : > { %v923_v58 = vpop.f32.mrb[18].mxu0  ;;  %v2624_v0 = vmul.f32 0.125, %v921_v54  ;;  %1954 = vmatpush3.bf16.msra.mxu0 %v1189_v51 }
 0x1c7   : > { %v1156_v61 = vpack.c.bf16 %v923_v58, %v919_v52  ;;  %v925_v62 = vpop.f32.mrb[19].mxu0  ;;  %1955 = vmatprep.subr.bf16.mxu0 %v1190_v15 }
 0x1c8   : > { %v2626_v2 = vmul.f32 0.125, %v925_v62  ;;  %v1295_v62 = vadd.s32 40, %v2667_v9 }
 0x1c9   : > { %1919 = vmatprep.subr.bf16.mxu1 %v1156_v61 }
 0x1ca   : > { %v1180_v31 = vpack.c.bf16 %v2626_v2, %v2624_v0  ;;  %1920 = vmatpush3.bf16.xpose.msra.mxu1 %v1156_v61  ;;  %1956 = vmatpush3.bf16.msra.mxu0 %v1190_v15  ;;  %vm1313_vm4 = vcmp.le.s32.totalorder %v2670_v24, %v1295_v62 }
 0x1cb   : > { %1957 = vmatprep.subr.bf16.mxu0 %v1191_v22 }
 0x1cc   : > { %v929_v4 = vpop.f32.mrb[20].mxu0 }
 0x1cd   : > { %v931_v6 = vpop.f32.mrb[21].mxu0 }
 0x1ce   : > { %v933_v13 = vpop.f32.mrb[22].mxu0  ;;  %v1170_v21 = vmul.f32 0.125, %v931_v6  ;;  %1958 = vmatpush3.bf16.msra.mxu0 %v1191_v22  ;;  %v1300_v6 = vadd.s32 80, %v2667_v9 }
 0x1cf   : > { %v1157_v17 = vpack.c.bf16 %v933_v13, %v929_v4  ;;  %v935_v18 = vpop.f32.mrb[23].mxu0  ;;  %v1298_v4 = vadd.s32 64, %v2667_v9 }
 0x1d0   : > { %v1171_v29 = vmul.f32 0.125, %v935_v18  ;;  %vm1318_vm8 = vcmp.le.s32.totalorder %v2670_v24, %v1300_v6 }
 0x1d1   : > { %1921 = vmatprep.subr.bf16.mxu1 %v1157_v17  ;;  %vm1316_vm7 = vcmp.le.s32.totalorder %v2670_v24, %v1298_v4 }
 0x1d2   : > { %v1181_v32 = vpack.c.bf16 %v1171_v29, %v1170_v21  ;;  %1922 = vmatpush3.bf16.xpose.msra.mxu1 %v1157_v17  ;;  %v1302_v21 = vadd.s32 96, %v2667_v9 }
 0x1d4   : > { %v939_v33 = vpop.f32.mrb[24].mxu0  ;;  %vm1320_vm11 = vcmp.le.s32.totalorder %v2670_v24, %v1302_v21 }
 0x1d5   : > { %v941_v36 = vpop.f32.mrb[25].mxu0 }
 0x1d6   : > { %v943_v39 = vpop.f32.mrb[26].mxu0  ;;  %v1172_v28 = vmul.f32 0.125, %v941_v36 }
 0x1d7   : > { %v1158_v44 = vpack.c.bf16 %v943_v39, %v939_v33  ;;  %v945_v45 = vpop.f32.mrb[27].mxu0 }
 0x1d8   : > { %v1173_v52 = vmul.f32 0.125, %v945_v45 }
 0x1d9   : > { %1923 = vmatprep.subr.bf16.mxu1 %v1158_v44 }
 0x1da   : > { %v1182_v53 = vpack.c.bf16 %v1173_v52, %v1172_v28  ;;  %1924 = vmatpush3.bf16.xpose.msra.mxu1 %v1158_v44 }
 0x1dc   : > { %v949_v54 = vpop.f32.mrb[28].mxu0 }
 0x1dd   : > { %v951_v1 = vpop.f32.mrb[29].mxu0 }
 0x1de   : > { %v953_v55 = vpop.f32.mrb[30].mxu0  ;;  %v1174_v58 = vmul.f32 0.125, %v951_v1 }
 0x1df   : > { %v1159_v23 = vpack.c.bf16 %v953_v55, %v949_v54  ;;  %v955_v56 = vpop.f32.mrb[31].mxu0 }
 0x1e0   : > { %v1175_v59 = vmul.f32 0.125, %v955_v56 }
 0x1e1   : > { %1925 = vmatprep.subr.bf16.mxu1 %v1159_v23 }
 0x1e2   : > { %v1183_v7 = vpack.c.bf16 %v1175_v59, %v1174_v58  ;;  %1926 = vmatpush3.bf16.xpose.msra.mxu1 %v1159_v23 }
 0x1e3   : > { %1975 = vmatprep.subr.bf16.mxu1 %v2613_v25 }
 0x1e9   : > { %1928 = vmatmul.mubr.bf16.vlgmr.msra.gmra.mrb[48].mxu1 %v1177_v10  ;;  %v1292_v10 = vadd.s32 16, %v2667_v9 }
 0x1ea   : > { %1931 = vmatprep.mubr.bf16.mxu1 %v1178_v27  ;;  %1983 = vmatpush3.bf16.msra.mxu1 %v2613_v25  ;;  %v1291_v25 = vadd.s32 8, %v2667_v9 }
 0x1eb   : > { %1976 = vmatprep.subr.bf16.mxu1 %v2611_v50  ;;  %vm1310_vm0 = vcmp.le.s32.totalorder %v2670_v24, %v1292_v10 }
 0x1ec   : > { %vm1309_vm3 = vcmp.le.s32.totalorder %v2670_v24, %v1291_v25 }
 0x1ee   : > { %1984 = vmatpush3.bf16.msra.mxu1 %v2611_v50 }
 0x1ef   : > { %1977 = vmatprep.subr.bf16.mxu1 %v2631_v3 }
 0x1f1   : > { %1932 = vmatmul.mubr.bf16.gmra.mrb[52].mxu1 %v1179_v19 }
 0x1f2   : > { %1935 = vmatprep.mubr.bf16.mxu1 %v1180_v31  ;;  %1985 = vmatpush3.bf16.msra.mxu1 %v2631_v3  ;;  %v1294_v31 = vadd.s32 32, %v2667_v9 }
 0x1f3   : > { %1978 = vmatprep.subr.bf16.mxu1 %v2629_v37 }
 0x1f4   : > { %vm1312_vm6 = vcmp.le.s32.totalorder %v2670_v24, %v1294_v31 }
 0x1f6   : > { %1986 = vmatpush3.bf16.msra.mxu1 %v2629_v37 }
 0x1f7   : > { %1979 = vmatprep.subr.bf16.mxu1 %v1188_v30 }
 0x1f9   : > { %1936 = vmatmul.mubr.bf16.gmra.mrb[56].mxu1 %v1181_v32  ;;  %v1304_v32 = vadd.s32 112, %v2667_v9 }
 0x1fa   : > { %1939 = vmatprep.mubr.bf16.mxu1 %v1182_v53  ;;  %1987 = vmatpush3.bf16.msra.mxu1 %v1188_v30  ;;  %v1297_v30 = vadd.s32 56, %v2667_v9 }
 0x1fb   : > { %1980 = vmatprep.subr.bf16.mxu1 %v1189_v51  ;;  %vm1322_vm13 = vcmp.le.s32.totalorder %v2670_v24, %v1304_v32 }
 0x1fc   : > { %vm1315_vm12 = vcmp.le.s32.totalorder %v2670_v24, %v1297_v30 }
 0x1fe   : > { %1988 = vmatpush3.bf16.msra.mxu1 %v1189_v51 }
 0x1ff   : > { %1981 = vmatprep.subr.bf16.mxu1 %v1190_v15 }
 0x201   : > { %1940 = vmatmul.mubr.bf16.gmra.mrb[60].mxu1 %v1183_v7 }
 0x202   : > { %1989 = vmatpush3.bf16.msra.mxu1 %v1190_v15 }
 0x203   : > { %1982 = vmatprep.subr.bf16.mxu1 %v1191_v22 }
 0x206   : > { %1990 = vmatpush3.bf16.msra.mxu1 %v1191_v22 }
 0x2bc   : > { %v1929_v27 = vpop.f32.mrb[48].mxu1 }
 0x2bd   : > { %v1226_v48 = vpop.f32.mrb[49].mxu1  ;;  %v2675_v49 = vsel %vm1310_vm0, %v1929_v27, -inf  ;;  %vm1589_vm0 = vcmask 523264  }
 0x2be   : > { %1344 = vmax.xlane.f32.xlu0 %v2675_v49  ;;  %v1930_v50 = vpop.f32.mrb[50].mxu1  ;;  %v2684_v61 = vsel %vm1308_vm2, %v1226_v48, -inf }
 0x2bf   : > { %v1229_v19 = vpop.f32.mrb[51].mxu1  ;;  %v2681_v60 = vsel %vm1311_vm1, %v1930_v50, -inf }
 0x2c0   : > { %1346 = vmax.xlane.f32.xlu1 %v2681_v60  ;;  %v2690_v37 = vsel %vm1309_vm3, %v1229_v19, -inf }
 0x2c2   : > { %1340 = vmax.xlane.f32.xlu0 %v2684_v61 }
 0x2c4   : > { %v1933_v0 = vpop.f32.mrb[52].mxu1 }
 0x2c5   : > { %v1242_v2 = vpop.f32.mrb[53].mxu1  ;;  %v2700_v5 = vsel %vm1314_vm5, %v1933_v0, -inf }
 0x2c6   : > { %1342 = vmax.xlane.f32.xlu0 %v2690_v37  ;;  %v1934_v3 = vpop.f32.mrb[54].mxu1  ;;  %v2707_v14 = vsel %vm1312_vm6, %v1242_v2, -inf }
 0x2c7   : > { %v1245_v40 = vpop.f32.mrb[55].mxu1  ;;  %v2736_v39 = vsel %vm1315_vm12, %v1934_v3, -inf }
 0x2c8   : > { %v2697_v34 = vsel %vm1313_vm4, %v1245_v40, -inf }
 0x2c9   : > { %1350 = vmax.xlane.f32.xlu1 %v2697_v34 }
 0x2ca   : > { %1352 = vmax.xlane.f32.xlu0 %v2700_v5 }
 0x2cc   : > { %v1937_v12 = vpop.f32.mrb[56].mxu1 }
 0x2cd   : > { %v1258_v13 = vpop.f32.mrb[57].mxu1  ;;  %v2717_v29 = vsel %vm1318_vm8, %v1937_v12, -inf }
 0x2ce   : > { %1348 = vmax.xlane.f32.xlu0 %v2707_v14  ;;  %v1938_v16 = vpop.f32.mrb[58].mxu1  ;;  %v2710_v17 = vsel %vm1316_vm7, %v1258_v13, -inf }
 0x2cf   : > { %1356 = vmax.xlane.f32.xlu1 %v2710_v17  ;;  %v1261_v18 = vpop.f32.mrb[59].mxu1  ;;  %v2720_v51 = vsel %vm1319_vm9, %v1938_v16, -inf }
 0x2d0   : > { %v2727_v35 = vsel %vm1317_vm10, %v1261_v18, -inf }
 0x2d2   : > { %1360 = vmax.xlane.f32.xlu0 %v2717_v29 }
 0x2d3   : > { %1362 = vmax.xlane.f32.xlu1 %v2720_v51 }
 0x2d4   : > { %v1941_v43 = vpop.f32.mrb[60].mxu1 }
 0x2d5   : > { %v1274_v33 = vpop.f32.mrb[61].mxu1  ;;  %v2738_v41 = vsel %vm1322_vm13, %v1941_v43, -inf }
 0x2d6   : > { %v1942_v57 = vpop.f32.mrb[62].mxu1  ;;  %v2729_v36 = vsel %vm1320_vm11, %v1274_v33, -inf }
 0x2d7   : > { %1358 = vmax.xlane.f32.xlu1 %v2727_v35  ;;  %1364 = vmax.xlane.f32.xlu0 %v2729_v36  ;;  %v1277_v46 = vpop.f32.mrb[63].mxu1  ;;  %v2748_v45 = vsel %vm1323_vm15, %v1942_v57, -inf }
 0x2d8   : > { %v2744_v44 = vsel %vm1321_vm14, %v1277_v46, -inf }
 0x2db   : > { %1354 = vmax.xlane.f32.xlu1 %v2736_v39  ;;  %1368 = vmax.xlane.f32.xlu0 %v2738_v41 }
 0x2df   : > { %1366 = vmax.xlane.f32.xlu1 %v2744_v44 }
 0x2e3   : > { %1370 = vmax.xlane.f32.xlu1 %v2748_v45 }
 0x34b   : > { %v1345_v47 = vpop.xlane.xlu0 %1344 }
 0x34c   : > { %v1374_v28 = vsub.f32 %v2675_v49, %v1345_v47 }
 0x34d   : > { %v1347_v52 = vpop.xlane.xlu1 %1346 }
 0x34e   : > { %v1392_v22 = vmul.f32 1.442695, %v1374_v28  ;;  %v1375_v15 = vsub.f32 %v2681_v60, %v1347_v52 }
 0x34f   : > { %v1341_v53 = vpop.xlane.xlu0 %1340 }
 0x350   : > { %2177 = vpow2.f32 %v1392_v22  ;;  %v1394_v54 = vmul.f32 1.442695, %v1375_v15  ;;  %v1372_v1 = vsub.f32 %v2684_v61, %v1341_v53 }
 0x352   : > { %2179 = vpow2.f32 %v1394_v54  ;;  %v1388_v55 = vmul.f32 1.442695, %v1372_v1 }
 0x353   : > { %v1343_v23 = vpop.xlane.xlu0 %1342 }
 0x354   : > { %2181 = vpow2.f32 %v1388_v55  ;;  %v1373_v56 = vsub.f32 %v2690_v37, %v1343_v23 }
 0x356   : > { %v1390_v58 = vmul.f32 1.442695, %v1373_v56  ;;  %v1351_v59 = vpop.xlane.xlu1 %1350 }
 0x357   : > { %v1377_v7 = vsub.f32 %v2697_v34, %v1351_v59  ;;  %v1353_v8 = vpop.xlane.xlu0 %1352 }
 0x358   : > { %2183 = vpow2.f32 %v1390_v58  ;;  %v1378_v37 = vsub.f32 %v2700_v5, %v1353_v8 }
 0x359   : > { %v1398_v9 = vmul.f32 1.442695, %v1377_v7 }
 0x35a   : > { %v2756_v10 = vpop.eup %2177  ;;  %v1400_v11 = vmul.f32 1.442695, %v1378_v37 }
 0x35b   : > { %2185 = vpow2.f32 %v1398_v9  ;;  %v1349_v24 = vpop.xlane.xlu0 %1348  ;;  %1424 = vadd.xlane.f32.xlu0 %v2756_v10 }
 0x35c   : > { %v2759_v26 = vpop.eup %2179  ;;  %v1376_v27 = vsub.f32 %v2707_v14, %v1349_v24  ;;  %v1357_v48 = vpop.xlane.xlu1 %1356 }
 0x35d   : > { %1426 = vadd.xlane.f32.xlu1 %v2759_v26  ;;  %v1380_v19 = vsub.f32 %v2710_v17, %v1357_v48 }
 0x35e   : > { %v2763_v49 = vpop.eup %2181  ;;  %v1396_v50 = vmul.f32 1.442695, %v1376_v27 }
 0x35f   : > { %v1361_v25 = vpop.xlane.xlu0 %1360  ;;  %1420 = vadd.xlane.f32.xlu0 %v2763_v49  ;;  %v1404_v3 = vmul.f32 1.442695, %v1380_v19 }
 0x360   : > { %2187 = vpow2.f32 %v1396_v50  ;;  %v1382_v60 = vsub.f32 %v2717_v29, %v1361_v25  ;;  %v1363_v61 = vpop.xlane.xlu1 %1362 }
 0x361   : > { %v1383_v62 = vsub.f32 %v2720_v51, %v1363_v61 }
 0x362   : > { %v2769_v63 = vpop.eup %2183  ;;  %v1408_v0 = vmul.f32 1.442695, %v1382_v60 }
 0x363   : > { %v1410_v2 = vmul.f32 1.442695, %v1383_v62  ;;  %1422 = vadd.xlane.f32.xlu1 %v2769_v63 }
 0x364   : > { %2189 = vpow2.f32 %v1408_v0  ;;  %v1359_v31 = vpop.xlane.xlu1 %1358  ;;  %v1365_v40 = vpop.xlane.xlu0 %1364 }
 0x365   : > { %v2773_v4 = vpop.eup %2185  ;;  %2191 = vpow2.f32 %v1410_v2  ;;  %v1381_v34 = vsub.f32 %v2727_v35, %v1359_v31  ;;  %v1384_v12 = vsub.f32 %v2729_v36, %v1365_v40 }
 0x366   : > { %2193 = vpow2.f32 %v1404_v3 }
 0x367   : > { %v1406_v6 = vmul.f32 1.442695, %v1381_v34  ;;  %1430 = vadd.xlane.f32.xlu1 %v2773_v4  ;;  %v1412_v18 = vmul.f32 1.442695, %v1384_v12 }
 0x368   : > { %v1355_v13 = vpop.xlane.xlu1 %1354  ;;  %v1369_v14 = vpop.xlane.xlu0 %1368 }
 0x369   : > { %2195 = vpow2.f32 %v1406_v6  ;;  %v1379_v5 = vsub.f32 %v2736_v39, %v1355_v13  ;;  %v1386_v20 = vsub.f32 %v2738_v41, %v1369_v14 }
 0x36a   : > { %v2779_v16 = vpop.eup %2187  ;;  %2197 = vpow2.f32 %v1400_v11 }
 0x36b   : > { %v1402_v17 = vmul.f32 1.442695, %v1379_v5  ;;  %1428 = vadd.xlane.f32.xlu0 %v2779_v16  ;;  %v1416_v43 = vmul.f32 1.442695, %v1386_v20 }
 0x36c   : > { %v1367_v21 = vpop.xlane.xlu1 %1366 }
 0x36d   : > { %2199 = vpow2.f32 %v1402_v17  ;;  %v1385_v29 = vsub.f32 %v2744_v44, %v1367_v21 }
 0x36e   : > { %v2784_v51 = vpop.eup %2189  ;;  %2201 = vpow2.f32 %v1412_v18 }
 0x36f   : > { %v2786_v30 = vpop.eup %2191  ;;  %v1414_v32 = vmul.f32 1.442695, %v1385_v29  ;;  %1440 = vadd.xlane.f32.xlu0 %v2784_v51 }
 0x370   : > { %1442 = vadd.xlane.f32.xlu1 %v2786_v30  ;;  %v1371_v33 = vpop.xlane.xlu1 %1370  ;;  %v2791_v35 = vpop.eup %2193 }
 0x371   : > { %2203 = vpow2.f32 %v1414_v32  ;;  %v1387_v57 = vsub.f32 %v2748_v45, %v1371_v33 }
 0x372   : > { %2205 = vpow2.f32 %v1416_v43 }
 0x373   : > { %v2793_v36 = vpop.eup %2195  ;;  %v1418_v46 = vmul.f32 1.442695, %v1387_v57  ;;  %1436 = vadd.xlane.f32.xlu0 %v2791_v35 }
 0x374   : > { %1438 = vadd.xlane.f32.xlu1 %v2793_v36  ;;  %v2797_v38 = vpop.eup %2197 }
 0x375   : > { %2207 = vpow2.f32 %v1418_v46 }
 0x377   : > { %v2799_v39 = vpop.eup %2199  ;;  %1432 = vadd.xlane.f32.xlu0 %v2797_v38 }
 0x378   : > { %1434 = vadd.xlane.f32.xlu1 %v2799_v39  ;;  %v2803_v41 = vpop.eup %2201 }
 0x37b   : > { %v2805_v42 = vpop.eup %2203  ;;  %1444 = vadd.xlane.f32.xlu0 %v2803_v41 }
 0x37c   : > { %1446 = vadd.xlane.f32.xlu1 %v2805_v42  ;;  %v2809_v44 = vpop.eup %2205 }
 0x37f   : > { %v2811_v45 = vpop.eup %2207  ;;  %1448 = vadd.xlane.f32.xlu0 %v2809_v44 }
 0x380   : > { %1450 = vadd.xlane.f32.xlu1 %v2811_v45 }
 0x3e8   : > { %v1425_v47 = vpop.xlane.xlu0 %1424 }
 0x3ea   : > { %v1427_v28 = vpop.xlane.xlu1 %1426 }
 0x3eb   : > { %2209 = vrcp.f32 %v1427_v28 }
 0x3ec   : > { %v1421_v52 = vpop.xlane.xlu0 %1420 }
 0x3ed   : > { %2211 = vrcp.f32 %v1421_v52 }
 0x3ee   : > { %2213 = vrcp.f32 %v1425_v47 }
 0x3f0   : > { %v1423_v22 = vpop.xlane.xlu1 %1422 }
 0x3f1   : > { %2215 = vrcp.f32 %v1423_v22 }
 0x3f4   : > { %v1431_v15 = vpop.xlane.xlu1 %1430 }
 0x3f5   : > { %2217 = vrcp.f32 %v1431_v15  ;;  %v2210_v53 = vpop.eup %2209 }
 0x3f6   : > { %v1471_v56 = vmul.f32 %v2210_v53, %v2759_v26 }
 0x3f7   : > { %v2212_v1 = vpop.eup %2211 }
 0x3f8   : > { %v1429_v54 = vpop.xlane.xlu0 %1428  ;;  %v2214_v55 = vpop.eup %2213  ;;  %v1468_v59 = vmul.f32 %v2212_v1, %v2763_v49 }
 0x3f9   : > { %2219 = vrcp.f32 %v1429_v54  ;;  %v1470_v8 = vmul.f32 %v2214_v55, %v2756_v10 }
 0x3fb   : > { %v2216_v23 = vpop.eup %2215  ;;  %v1485_v27 = vpack.c.bf16 %v1471_v56, %v1470_v8 }
 0x3fc   : > { %v1441_v58 = vpop.xlane.xlu0 %1440  ;;  %v1469_v7 = vmul.f32 %v2216_v23, %v2769_v63 }
 0x3fd   : > { %v1443_v9 = vpop.xlane.xlu1 %1442  ;;  %2221 = vrcp.f32 %v1441_v58 }
 0x3fe   : > { %v1484_v24 = vpack.c.bf16 %v1469_v7, %v1468_v59  ;;  %2223 = vrcp.f32 %v1443_v9 }
 0x3ff   : > { %v2218_v50 = vpop.eup %2217 }
 0x400   : > { %v1437_v48 = vpop.xlane.xlu0 %1436  ;;  %1959 = vmatprep.mubr.bf16.mxu0 %v1484_v24  ;;  %v1473_v60 = vmul.f32 %v2218_v50, %v2773_v4 }
 0x401   : > { %2225 = vrcp.f32 %v1437_v48  ;;  %1960 = vmatmul.mubr.bf16.vlgmr.msra.gmra.mrb[32].mxu0 %v1485_v27  ;;  %v1439_v25 = vpop.xlane.xlu1 %1438 }
 0x402   : > { %2227 = vrcp.f32 %v1439_v25 }
 0x403   : > { %v2220_v26 = vpop.eup %2219 }
 0x404   : > { %v1433_v19 = vpop.xlane.xlu0 %1432  ;;  %v1472_v49 = vmul.f32 %v2220_v26, %v2779_v16 }
 0x405   : > { %2229 = vrcp.f32 %v1433_v19  ;;  %v1435_v10 = vpop.xlane.xlu1 %1434 }
 0x406   : > { %2231 = vrcp.f32 %v1435_v10  ;;  %v1486_v61 = vpack.c.bf16 %v1473_v60, %v1472_v49 }
 0x407   : > { %v2222_v62 = vpop.eup %2221 }
 0x408   : > { %v1445_v63 = vpop.xlane.xlu0 %1444  ;;  %1963 = vmatprep.mubr.bf16.mxu0 %v1486_v61  ;;  %v2224_v0 = vpop.eup %2223  ;;  %v1478_v31 = vmul.f32 %v2222_v62, %v2784_v51 }
 0x409   : > { %2233 = vrcp.f32 %v1445_v63  ;;  %v1447_v2 = vpop.xlane.xlu1 %1446  ;;  %v1479_v40 = vmul.f32 %v2224_v0, %v2786_v30 }
 0x40a   : > { %2235 = vrcp.f32 %v1447_v2 }
 0x40b   : > { %v2226_v37 = vpop.eup %2225  ;;  %v1489_v14 = vpack.c.bf16 %v1479_v40, %v1478_v31 }
 0x40c   : > { %v2228_v3 = vpop.eup %2227  ;;  %v1449_v34 = vpop.xlane.xlu0 %1448  ;;  %v1476_v4 = vmul.f32 %v2226_v37, %v2791_v35 }
 0x40d   : > { %2237 = vrcp.f32 %v1449_v34  ;;  %v1451_v6 = vpop.xlane.xlu1 %1450  ;;  %v1477_v11 = vmul.f32 %v2228_v3, %v2793_v36 }
 0x40e   : > { %2239 = vrcp.f32 %v1451_v6 }
 0x40f   : > { %v2230_v12 = vpop.eup %2229  ;;  %v1488_v13 = vpack.c.bf16 %v1477_v11, %v1476_v4 }
 0x410   : > { %v2232_v5 = vpop.eup %2231  ;;  %v1474_v16 = vmul.f32 %v2230_v12, %v2797_v38 }
 0x411   : > { %1967 = vmatprep.mubr.bf16.mxu1 %v1488_v13  ;;  %v1475_v17 = vmul.f32 %v2232_v5, %v2799_v39 }
 0x412   : > { %1968 = vmatmul.mubr.bf16.vlgmr.msra.gmra.mrb[64].mxu1 %v1489_v14 }
 0x413   : > { %v2234_v18 = vpop.eup %2233  ;;  %v1487_v20 = vpack.c.bf16 %v1475_v17, %v1474_v16 }
 0x414   : > { %v2236_v21 = vpop.eup %2235  ;;  %v1480_v29 = vmul.f32 %v2234_v18, %v2803_v41 }
 0x415   : > { %1964 = vmatmul.mubr.bf16.gmra.mrb[36].mxu0 %v1487_v20  ;;  %v1481_v51 = vmul.f32 %v2236_v21, %v2805_v42 }
 0x417   : > { %v2238_v30 = vpop.eup %2237  ;;  %v1490_v32 = vpack.c.bf16 %v1481_v51, %v1480_v29 }
 0x418   : > { %v2240_v43 = vpop.eup %2239  ;;  %v1482_v33 = vmul.f32 %v2238_v30, %v2809_v44 }
 0x419   : > { %1971 = vmatprep.mubr.bf16.mxu1 %v1490_v32  ;;  %v1483_v57 = vmul.f32 %v2240_v43, %v2811_v45 }
 0x41b   : > { %v1491_v35 = vpack.c.bf16 %v1483_v57, %v1482_v33 }
 0x41d   : > { %1972 = vmatmul.mubr.bf16.gmra.mrb[68].mxu1 %v1491_v35 }
 0x4d4   : > { %v1961_v36 = vpop.f32.mrb[32].mxu0 }
 0x4d5   : > { %1592 = vst.msk [vmem:[%s2836_s17 + $0x10] sm:$0xff] %vm1589_vm0, %v1961_v36  ;;  %v1526_v46 = vpop.f32.mrb[33].mxu0 }
 0x4d6   : > { %1590 = vst.msk [vmem:[%s2836_s17] sm:$0xff] %vm1589_vm0, %v1526_v46  ;;  %v1962_v38 = vpop.f32.mrb[34].mxu0 }
 0x4d7   : > { %1593 = vst.msk [vmem:[%s2836_s17 + $0x18] sm:$0xff] %vm1589_vm0, %v1962_v38  ;;  %v1529_v39 = vpop.f32.mrb[35].mxu0 }
 0x4d8   : > { %1591 = vst.msk [vmem:[%s2836_s17 + $0x8] sm:$0xff] %vm1589_vm0, %v1529_v39 }
 0x4e5   : > { %v1969_v41 = vpop.f32.mrb[64].mxu1 }
 0x4e6   : > { %1600 = vst.msk [vmem:[%s2836_s17 + $0x50] sm:$0xff] %vm1589_vm0, %v1969_v41  ;;  %v1558_v42 = vpop.f32.mrb[65].mxu1 }
 0x4e7   : > { %1598 = vst.msk [vmem:[%s2836_s17 + $0x40] sm:$0xff] %vm1589_vm0, %v1558_v42  ;;  %v1970_v44 = vpop.f32.mrb[66].mxu1 }
 0x4e8   : > { %1601 = vst.msk [vmem:[%s2836_s17 + $0x58] sm:$0xff] %vm1589_vm0, %v1970_v44  ;;  %v1965_v45 = vpop.f32.mrb[36].mxu0  ;;  %v1561_v47 = vpop.f32.mrb[67].mxu1 }
 0x4e9   : > { %1596 = vst.msk [vmem:[%s2836_s17 + $0x30] sm:$0xff] %vm1589_vm0, %v1965_v45  ;;  %1599 = vst.msk [vmem:[%s2836_s17 + $0x48] sm:$0xff] %vm1589_vm0, %v1561_v47  ;;  %v1542_v28 = vpop.f32.mrb[37].mxu0 }
 0x4ea   : > { %1594 = vst.msk [vmem:[%s2836_s17 + $0x20] sm:$0xff] %vm1589_vm0, %v1542_v28  ;;  %v1966_v52 = vpop.f32.mrb[38].mxu0 }
 0x4eb   : > { %1597 = vst.msk [vmem:[%s2836_s17 + $0x38] sm:$0xff] %vm1589_vm0, %v1966_v52  ;;  %v1545_v22 = vpop.f32.mrb[39].mxu0 }
 0x4ec   : > { %1595 = vst.msk [vmem:[%s2836_s17 + $0x28] sm:$0xff] %vm1589_vm0, %v1545_v22 }
 0x4f0   : > { %v1973_v15 = vpop.f32.mrb[68].mxu1 }
 0x4f1   : > { %1604 = vst.msk [vmem:[%s2836_s17 + $0x70] sm:$0xff] %vm1589_vm0, %v1973_v15  ;;  %v1574_v53 = vpop.f32.mrb[69].mxu1 }
 0x4f2   : > { %1602 = vst.msk [vmem:[%s2836_s17 + $0x60] sm:$0xff] %vm1589_vm0, %v1574_v53  ;;  %v1974_v54 = vpop.f32.mrb[70].mxu1 }
 0x4f3   : > { %1605 = vst.msk [vmem:[%s2836_s17 + $0x78] sm:$0xff] %vm1589_vm0, %v1974_v54  ;;  %v1577_v1 = vpop.f32.mrb[71].mxu1 }
 0x4f4   : > { %1603 = vst.msk [vmem:[%s2836_s17 + $0x68] sm:$0xff] %vm1589_vm0, %v1577_v1 }
 0x4f5 PF: > { %p13_p8 = scmp.ge.s32.totalorder %s2405_s19, 4   ;;  %s2897_s9 = smov %s2329_s10 }
 0x4f6   : > { %s2898_s10 = smov %s2333_s11  ;;  %s2899_s11 = smov %s2431_s6 }
 0x4f7   : > { %s2900_s12 = smov %s2405_s19  ;;  %15 = sbr.rel (!%p13_p8) target bundleno = 4 (0x4), region = 72 }
 0x4fe   :  { %1627 = vsyncpa [#allocation3], 1 }
 0x4ff   :  { %1629 = vsyncpa [#allocation3 + $0x1], 1 }
 0x500   :  { %1630 = vsyncpa [#allocation5], 1 }

</bundles_post_ra>
